<compile_context>
chip_gen: v7x
topology: tpu7x:2x2x1
jax: 0.10.0
libtpu: 0.0.40
codegen_flags: <defaults>
</compile_context>

<pallas_src>
import functools

import jax
import jax.numpy as jnp
from jax.experimental import pallas as pl
from jax.experimental.pallas import tpu as pltpu


# ---------------------------------------------------------------------------
# helpers
# ---------------------------------------------------------------------------
def _round_up(x, m):
    return ((x + m - 1) // m) * m


def _row_tile(Ho, Wo, target=512):
    """Largest divisor `th` of Ho with th * Wo <= target (at least 1)."""
    th = max(1, min(Ho, target // max(1, Wo)))
    while Ho % th:
        th -= 1
    return th


def _flat_tile(M, cap=1024):
    """Largest divisor of M that is <= cap and a multiple of 8 (else M itself)."""
    tm = min(M, cap)
    while tm > 1 and (M % tm or tm % 8):
        tm -= 1
    if M % tm or tm % 8:
        return M
    return tm


# ---------------------------------------------------------------------------
# Pallas kernels
# ---------------------------------------------------------------------------
def _convt_kernel(x_ref, w_ref, b_ref, o_ref, *stats_refs, k, th, Wo, act, slope):
    """Fused ConvTranspose2d tile.

    x_ref : (1, Hp, Wp, Ci)   zero-dilated + padded NHWC input (full spatial, one batch)
    w_ref : (k*k, Ci, Cop)    per-tap weight matrices (Cout padded to 128 lanes)
    b_ref : (1, Cop)          bias
    o_ref : (1, th*Wo, Cop)   activated output rows of this tile
    stats : optional (1,1,1,Cop) x2 -> per-tile sum / sum-of-squares for BatchNorm
    """
    r = pl.program_id(1)
    h0 = pl.multiple_of(r * th, th)          # first output row of this tile
    Ci = x_ref.shape[-1]
    Cop = o_ref.shape[-1]

    acc = jnp.zeros((th * Wo, Cop), jnp.float32) + b_ref[...]
    for di in range(k):
        for dj in range(k):
            patch = x_ref[0, pl.ds(h0 + di, th), dj:dj + Wo, :]     # (th, Wo, Ci)
            patch = patch.reshape(th * Wo, Ci)                      # in-VMEM im2col
            acc = acc + jnp.dot(patch, w_ref[di * k + dj],
                                preferred_element_type=jnp.float32)

    if act == "leaky_relu":
        acc = jnp.where(acc >= 0, acc, slope * acc)
    else:  # tanh
        acc = jnp.tanh(acc)

    o_ref[0] = acc.astype(o_ref.dtype)

    if stats_refs:  # fused BatchNorm partial statistics (post-activation)
        s1_ref, s2_ref = stats_refs
        s1_ref[0, 0] = jnp.sum(acc, axis=0, keepdims=True)
        s2_ref[0, 0] = jnp.sum(acc * acc, axis=0, keepdims=True)


def _gemm_bias_act_kernel(a_ref, w_ref, b_ref, o_ref, *, act, slope):
    """Plain GEMM + bias + activation (only used for the tiny first layer)."""
    acc = jnp.dot(a_ref[...], w_ref[...], preferred_element_type=jnp.float32)
    acc = acc + b_ref[...]
    if act == "leaky_relu":
        acc = jnp.where(acc >= 0, acc, slope * acc)
    else:
        acc = jnp.tanh(acc)
    o_ref[...] = acc.astype(o_ref.dtype)


def _scale_shift_kernel(x_ref, a_ref, b_ref, o_ref):
    """BatchNorm apply pass: y = x * scale + shift (per channel)."""
    o_ref[...] = (x_ref[...].astype(jnp.float32) * a_ref[...] + b_ref[...]
                  ).astype(o_ref.dtype)


# ---------------------------------------------------------------------------
# Kernel wrappers
# ---------------------------------------------------------------------------
def _conv_transpose_layer(x_nhwc, weight, bias, stride, padding, act, slope,
                          use_bf16, want_stats):
    """ConvTranspose2d + bias + activation (+ BN partial stats) on NHWC input.

    Returns (y, stats, dims): y is (B, Ho*Wo, Cop) with Cop = Cout padded to 128;
    stats is None or a pair of (B, nR, 1, Cop) partial (sum, sumsq) arrays.
    """
    B, Hi, Wi, Ci = x_nhwc.shape
    assert weight.shape[0] == Ci
    Co, k = weight.shape[1], weight.shape[2]
    pd = k - 1 - padding
    Ho = (Hi - 1) * stride - 2 * padding + k
    Wo = (Wi - 1) * stride - 2 * padding + k
    Hp, Wp = Ho + k - 1, Wo + k - 1
    Cop = _round_up(Co, 128)
    cdtype = jnp.bfloat16 if use_bf16 else jnp.float32
    out_dtype = cdtype if act == "leaky_relu" else jnp.float32

    # --- XLA glue: zero-dilate + pad the input (NHWC, channels-last) ---------
    xd = jnp.zeros((B, Hp, Wp, Ci), cdtype)
    xd = xd.at[:, pd:pd + (Hi - 1) * stride + 1:stride,
               pd:pd + (Wi - 1) * stride + 1:stride, :].set(x_nhwc.astype(cdtype))

    # per-tap weight matrices (transposed conv == correlation with flipped kernel),
    # zero-padded to a lane-dense Cout
    Wt = jnp.flip(weight, (2, 3)).transpose(2, 3, 0, 1).reshape(k * k, Ci, Co)
    Wt = jnp.pad(Wt, ((0, 0), (0, 0), (0, Cop - Co))).astype(cdtype)
    bp = jnp.pad(bias, (0, Cop - Co)).reshape(1, Cop).astype(jnp.float32)

    if Wo < 8:
        # Tiny spatial output (the 1x1 -> 4x4 latent layer): materialized im2col +
        # single-block GEMM.  Negligible cost at this size.
        cols = [xd[:, di:di + Ho, dj:dj + Wo, :]
                for di in range(k) for dj in range(k)]
        A = jnp.stack(cols, axis=3).reshape(B * Ho * Wo, k * k * Ci)
        Wm = Wt.reshape(k * k * Ci, Cop)
        y = pl.pallas_call(
            functools.partial(_gemm_bias_act_kernel, act=act, slope=slope),
            out_shape=jax.ShapeDtypeStruct((B * Ho * Wo, Cop), out_dtype),
            grid=(1,),
            in_specs=[pl.BlockSpec((B * Ho * Wo, k * k * Ci), lambda i: (0, 0)),
                      pl.BlockSpec((k * k * Ci, Cop), lambda i: (0, 0)),
                      pl.BlockSpec((1, Cop), lambda i: (0, 0))],
            out_specs=pl.BlockSpec((B * Ho * Wo, Cop), lambda i: (0, 0)),
        )(A, Wm, bp)
        return y.reshape(B, Ho * Wo, Cop), None, (B, Ho, Wo, Co, Cop)

    th = _row_tile(Ho, Wo)
    nR = Ho // th

    out_shapes = [jax.ShapeDtypeStruct((B, Ho * Wo, Cop), out_dtype)]
    out_specs = [pl.BlockSpec((1, th * Wo, Cop), lambda b, r: (b, r, 0))]
    if want_stats:
        out_shapes += [jax.ShapeDtypeStruct((B, nR, 1, Cop), jnp.float32)] * 2
        out_specs += [pl.BlockSpec((1, 1, 1, Cop), lambda b, r: (b, r, 0, 0))] * 2

    res = pl.pallas_call(
        functools.partial(_convt_kernel, k=k, th=th, Wo=Wo, act=act, slope=slope),
        out_shape=tuple(out_shapes) if want_stats else out_shapes[0],
        grid=(B, nR),
        in_specs=[
            pl.BlockSpec((1, Hp, Wp, Ci), lambda b, r: (b, 0, 0, 0)),   # resident per b
            pl.BlockSpec((k * k, Ci, Cop), lambda b, r: (0, 0, 0)),     # resident weights
            pl.BlockSpec((1, Cop), lambda b, r: (0, 0)),                # resident bias
        ],
        out_specs=tuple(out_specs) if want_stats else out_specs[0],
        compiler_params=pltpu.CompilerParams(
            dimension_semantics=("parallel", "parallel")),
    )(xd, Wt, bp)

    if want_stats:
        y, s1p, s2p = res
        return y, (s1p, s2p), (B, Ho, Wo, Co, Cop)
    return res, None, (B, Ho, Wo, Co, Cop)


def _batchnorm_apply(y_flat, scale, shift):
    """Tiled per-channel scale+shift on a (M, Cop) channels-last activation."""
    M, Cop = y_flat.shape
    tm = _flat_tile(M)
    return pl.pallas_call(
        _scale_shift_kernel,
        out_shape=jax.ShapeDtypeStruct((M, Cop), y_flat.dtype),
        grid=(M // tm,),
        in_specs=[pl.BlockSpec((tm, Cop), lambda i: (i, 0)),
                  pl.BlockSpec((1, Cop), lambda i: (0, 0)),
                  pl.BlockSpec((1, Cop), lambda i: (0, 0))],
        out_specs=pl.BlockSpec((tm, Cop), lambda i: (i, 0)),
        compiler_params=pltpu.CompilerParams(dimension_semantics=("parallel",)),
    )(y_flat, scale.reshape(1, Cop), shift.reshape(1, Cop))


# ---------------------------------------------------------------------------
# Generator forward
# ---------------------------------------------------------------------------
def generator_forward(x, params, leaky_relu_slope=0.2, eps=1e-5, use_bf16=True):
    """x: NCHW (B, input_size, 1, 1) -> NCHW output (B, 1, 64, 64)."""
    x = jnp.transpose(x, (0, 2, 3, 1))                 # NCHW -> NHWC, once
    n = len(params["weights"])
    for i in range(n):
        last = i == n - 1
        act = "tanh" if last else "leaky_relu"
        y, stats, (B, Ho, Wo, Co, Cop) = _conv_transpose_layer(
            x, params["weights"][i], params["biases"][i],
            params["strides"][i], params["paddings"][i],
            act, leaky_relu_slope, use_bf16 and not last, want_stats=not last)
        y = y.reshape(B * Ho * Wo, Cop)
        if not last:
            # BatchNorm2d, training-mode batch statistics (per channel over B,H,W).
            M = B * Ho * Wo
            if stats is None:
                yf = y.astype(jnp.float32)
                s1 = jnp.sum(yf, axis=0)
                s2 = jnp.sum(yf * yf, axis=0)
            else:
                s1 = jnp.sum(stats[0], axis=(0, 1, 2))
                s2 = jnp.sum(stats[1], axis=(0, 1, 2))
            mean = s1 / M
            var = jnp.maximum(s2 / M - mean * mean, 0.0)
            inv = jax.lax.rsqrt(var + eps)
            gamma = jnp.pad(params["gammas"][i], (0, Cop - Co), constant_values=1.0)
            beta = jnp.pad(params["betas"][i], (0, Cop - Co))
            scale = (gamma * inv).astype(jnp.float32)
            shift = (beta - mean * gamma * inv).astype(jnp.float32)
            y = _batchnorm_apply(y, scale, shift)
        x = y.reshape(B, Ho, Wo, Cop)[..., :Co]        # drop lane padding, stay NHWC
    return jnp.transpose(x, (0, 3, 1, 2))              # NHWC -> NCHW at the boundary


def init_generator_params(key, input_size, channels, kernels, strides, paddings):
    weights, biases, gammas, betas = [], [], [], []
    last = input_size
    n = len(channels)
    for i, (c, k) in enumerate(zip(channels, kernels)):
        key, wk, bk = jax.random.split(key, 3)
        shape = (last, c, k, k)                      # ConvTranspose2d weight layout
        if i < n - 1:
            # kaiming_normal_(nonlinearity='leaky_relu', a=0): std = sqrt(2/fan_in),
            # torch fan_in for this layout = size(1) * k * k = c * k * k
            std = (2.0 / (c * k * k)) ** 0.5
            w = std * jax.random.normal(wk, shape, jnp.float32)
            b = (1e-6 / 3) * jax.random.normal(bk, (c,), jnp.float32)
        else:
            # xavier_normal_: std = sqrt(2/(fan_in + fan_out))
            std = (2.0 / (c * k * k + last * k * k)) ** 0.5
            w = std * jax.random.normal(wk, shape, jnp.float32)
            b = jnp.zeros((c,), jnp.float32)
        weights.append(w)
        biases.append(b)
        if i < n - 1:
            gammas.append(jnp.ones((c,), jnp.float32))
            betas.append(jnp.zeros((c,), jnp.float32))
        last = c
    return {"weights": weights, "biases": biases, "gammas": gammas, "betas": betas,
            "strides": list(strides), "paddings": list(paddings)}


# ---------------------------------------------------------------------------
# Pure-JAX reference (for correctness check)
# ---------------------------------------------------------------------------
def _ref_forward(x, params, slope=0.2, eps=1e-5):
    n = len(params["weights"])
    for i in range(n):
        W = params["weights"][i]
        b = params["biases"][i]
        s = params["strides"][i]
        p = params["paddings"][i]
        k = W.shape[2]
        Wp = jnp.transpose(W[:, :, ::-1, ::-1], (1, 0, 2, 3))   # (Co, Ci, k, k)
        y = jax.lax.conv_general_dilated(
            x, Wp, window_strides=(1, 1),
            padding=[(k - 1 - p, k - 1 - p)] * 2,
            lhs_dilation=(s, s), rhs_dilation=(1, 1),
            dimension_numbers=("NCHW", "OIHW", "NCHW"))
        y = y + b.reshape(1, -1, 1, 1)
        if i < n - 1:
            y = jnp.where(y >= 0, y, slope * y)
            mean = jnp.mean(y, axis=(0, 2, 3), keepdims=True)
            var = jnp.mean((y - mean) ** 2, axis=(0, 2, 3), keepdims=True)
            y = (y - mean) * jax.lax.rsqrt(var + eps)
            y = y * params["gammas"][i].reshape(1, -1, 1, 1) \
                + params["betas"][i].reshape(1, -1, 1, 1)
        else:
            y = jnp.tanh(y)
        x = y
    return x


if __name__ == "__main__":
    # Small but architecture-faithful config (latent 1x1 input -> 64x64 output)
    input_size = 32
    channels = (64, 32, 16, 8, 1)
    kernels = (4, 4, 4, 4, 4)
    strides = (1, 2, 2, 2, 2)
    paddings = (0, 1, 1, 1, 1)
    batch = 2

    key = jax.random.PRNGKey(0)
    key, pkey, xkey, gkey, bkey = jax.random.split(key, 5)
    params = init_generator_params(pkey, input_size, channels, kernels, strides, paddings)
    # Exercise the BatchNorm affine path (PyTorch init is gamma=1, beta=0).
    params["gammas"] = [g + 0.1 * jax.random.normal(jax.random.fold_in(gkey, i), g.shape)
                        for i, g in enumerate(params["gammas"])]
    params["betas"] = [b + 0.1 * jax.random.normal(jax.random.fold_in(bkey, i), b.shape)
                       for i, b in enumerate(params["betas"])]

    x = jax.random.normal(xkey, (batch, input_size, 1, 1), jnp.float32)

    ref = jax.block_until_ready(_ref_forward(x, params))

    # f32 path: tight numerical check against the pure-JAX reference.
    out_f32 = jax.block_until_ready(generator_forward(x, params, use_bf16=False))
    assert out_f32.shape == (batch, 1, 64, 64), out_f32.shape
    err_f32 = float(jnp.max(jnp.abs(out_f32 - ref)))
    assert err_f32 < 2e-3, err_f32

    # bf16 MXU path: looser check (bf16 operand quantization, f32 accumulate).
    out_bf16 = jax.block_until_ready(generator_forward(x, params, use_bf16=True))
    assert out_bf16.shape == (batch, 1, 64, 64), out_bf16.shape
    err_bf16 = float(jnp.max(jnp.abs(out_bf16.astype(jnp.float32) - ref)))
    assert err_bf16 < 1e-1, err_bf16

    print("KERNEL_OK")
</pallas_src>

<mosaic_0001>
module attributes {stable_mosaic.version = 11 : i64} {
  func.func @_gemm_bias_act_kernel(%arg0: i32, %arg1: memref<32x512xf32, #tpu.memory_space<vmem>>, %arg2: memref<512x128xf32, #tpu.memory_space<vmem>>, %arg3: memref<1x128xf32, #tpu.memory_space<vmem>>, %arg4: memref<32x128xf32, #tpu.memory_space<vmem>>) attributes {dimension_semantics = [#tpu.dimension_semantics<arbitrary>], iteration_bounds = array<i64: 1>, scalar_prefetch = 0 : i64, scratch_operands = 0 : i64, tpu.core_type = #tpu.core_type<tc>, window_params = [{pipeline_mode = #tpu.pipeline_mode<synchronous>, transform_indices = @transform_0, window_bounds = array<i64: 32, 512>}, {pipeline_mode = #tpu.pipeline_mode<synchronous>, transform_indices = @transform_1, window_bounds = array<i64: 512, 128>}, {pipeline_mode = #tpu.pipeline_mode<synchronous>, transform_indices = @transform_2, window_bounds = array<i64: 1, 128>}, {pipeline_mode = #tpu.pipeline_mode<synchronous>, transform_indices = @transform_3, window_bounds = array<i64: 32, 128>}]} {
    %c0 = arith.constant 0 : index
    %c0_0 = arith.constant 0 : index
    %0 = vector.load %arg1[%c0, %c0_0] : memref<32x512xf32, #tpu.memory_space<vmem>>, vector<32x512xf32>
    %c0_1 = arith.constant 0 : index
    %c0_2 = arith.constant 0 : index
    %1 = vector.load %arg2[%c0_1, %c0_2] : memref<512x128xf32, #tpu.memory_space<vmem>>, vector<512x128xf32>
    %cst = arith.constant dense<0.000000e+00> : vector<32x128xf32>
    %2 = tpu.matmul %0, %1, %cst {dimension_numbers = #tpu.dot_dimension_numbers<[1], [0], [0], [1], [0, 0, 1, 1], [], []>} : vector<32x512xf32>, vector<512x128xf32>, vector<32x128xf32> -> vector<32x128xf32>
    %c0_3 = arith.constant 0 : index
    %c0_4 = arith.constant 0 : index
    %3 = vector.load %arg3[%c0_3, %c0_4] : memref<1x128xf32, #tpu.memory_space<vmem>>, vector<1x128xf32>
    %4 = vector.broadcast %3 : vector<1x128xf32> to vector<32x128xf32>
    %5 = arith.addf %2, %4 : vector<32x128xf32>
    %cst_5 = arith.constant 0.000000e+00 : f32
    %6 = vector.broadcast %cst_5 : f32 to vector<32x128xf32>
    %7 = arith.cmpf oge, %5, %6 : vector<32x128xf32>
    %cst_6 = arith.constant 2.000000e-01 : f32
    %8 = vector.broadcast %cst_6 : f32 to vector<32x128xf32>
    %9 = arith.mulf %8, %5 : vector<32x128xf32>
    %10 = arith.select %7, %5, %9 : vector<32x128xi1>, vector<32x128xf32>
    %c0_7 = arith.constant 0 : index
    %c0_8 = arith.constant 0 : index
    %11 = vector.load %arg4[%c0_7, %c0_8] : memref<32x128xf32, #tpu.memory_space<vmem>>, vector<32x128xf32>
    tpu.vector_store %arg4[%c0_7, %c0_8], %10 {strides = array<i32>} : memref<32x128xf32, #tpu.memory_space<vmem>>, vector<32x128xf32>,
    return
  }
  func.func @transform_0(%arg0: i32) -> (i32, i32) {
    %c0_i32 = arith.constant 0 : i32
    %c0_i32_0 = arith.constant 0 : i32
    %c0_i32_1 = arith.constant 0 : i32
    return %c0_i32, %c0_i32_0 : i32, i32
  }
  func.func @transform_1(%arg0: i32) -> (i32, i32) {
    %c0_i32 = arith.constant 0 : i32
    %c0_i32_0 = arith.constant 0 : i32
    %c0_i32_1 = arith.constant 0 : i32
    return %c0_i32, %c0_i32_0 : i32, i32
  }
  func.func @transform_2(%arg0: i32) -> (i32, i32) {
    %c0_i32 = arith.constant 0 : i32
    %c0_i32_0 = arith.constant 0 : i32
    %c0_i32_1 = arith.constant 0 : i32
    return %c0_i32, %c0_i32_0 : i32, i32
  }
  func.func @transform_3(%arg0: i32) -> (i32, i32) {
    %c0_i32 = arith.constant 0 : i32
    %c0_i32_0 = arith.constant 0 : i32
    %c0_i32_1 = arith.constant 0 : i32
    return %c0_i32, %c0_i32_0 : i32, i32
  }
}

</mosaic_0001>

<bundles_post_ra>
// kernel: tpu_custom_call.1
= control target key start
LH: loop header
LB: loop body
LE: loop exit
PB: predicated region body
PF: predicated region fallthrough
CT: control target
= control target key end

     0   :  { %8 = vsyncpa [#allocation3], 0  ;;  %s638_s0 = inlined_call_operand.hbm [shape: f32[32,512], index: 0, kind: input, shape index: {}]   ;;  %s639_s1 = inlined_call_operand.hbm [shape: f32[512,128], index: 1, kind: input, shape index: {}]   ;;  %s640_s2 = inlined_call_operand.vmem [shape: f32[1,128], index: 2, kind: input, shape index: {}]   ;;  %s641_s3 = inlined_call_operand.hbm [shape: f32[32,128], index: 3, kind: output, shape index: {}]  }
   0x1   :  { %9 = vsyncpa [#allocation6], 0 }
   0x2   :  { %10 = vsyncpa [#allocation4], 0  ;;  %s566_s12 = smov [#allocation2]   ;;  %s494_s16 = scalar_lea.hbm %s638_s0, 2048 }
   0x3   :  { %s16_s13 = sshll.u32 %s566_s12, 4  ;;  %p495_p0 = scmp.ne.s32.totalorder %s638_s0, %s494_s16  ;;  %s17_s13 = int_to_ptr.vmem [resolvable:$true] %s16_s13 }
   0x4   :  { %p498_p1 = scmp.lt.u32.totalorder %s494_s16, %s638_s0 }
   0x6   :  { %p500_p2 = pnand %p498_p1, %p495_p0 }
   0x8   :  { %503 = shalt.err (!%p500_p2)
}
   0x9   :  { %s504_s21 = scalar_lea.vmem %s17_s13, 2048  ;;  %p509_p4 = scmp.lt.s32.totalorder %s17_s13, %s17_s13 }
   0xa   :  { %p505_p3 = scmp.ne.s32.totalorder %s17_s13, %s504_s21  ;;  %p510_p5 = scmp.lt.s32.totalorder %s504_s21, %s504_s21 }
   0xc   :  { %p511_p6 = por %p510_p5, %p509_p4 }
   0xe   :  { %p512_p7 = pnand %p511_p6, %p505_p3 }
  0x10   :  { %515 = shalt.err (!%p512_p7)
}
  0x11   :  { %s567_s22 = smov 512   ;;  %s568_s23 = smov 32  }
  0x12   :  { %22 = dma.hbm_to_vmem [thread:$0]  %s638_s0, 2048, %s17_s13, [#allocation3], %s567_s22, %s567_s22, %s568_s23  }
  0x13   :  { %s569_s26 = smov [#allocation5]   ;;  %s516_s30 = scalar_lea.hbm %s639_s1, 8192 }
  0x14   :  { %s28_s27 = sshll.u32 %s569_s26, 4  ;;  %p517_p8 = scmp.ne.s32.totalorder %s639_s1, %s516_s30  ;;  %s29_s27 = int_to_ptr.vmem [resolvable:$true] %s28_s27 }
  0x15   :  { %p520_p9 = scmp.lt.u32.totalorder %s516_s30, %s639_s1 }
  0x17   :  { %p522_p10 = pnand %p520_p9, %p517_p8 }
  0x19   :  { %525 = shalt.err (!%p522_p10)
}
  0x1a   :  { %s526_s8 = scalar_lea.vmem %s29_s27, 8192  ;;  %p531_p12 = scmp.lt.s32.totalorder %s29_s27, %s29_s27 }
  0x1b   :  { %p527_p11 = scmp.ne.s32.totalorder %s29_s27, %s526_s8  ;;  %p532_p13 = scmp.lt.s32.totalorder %s526_s8, %s526_s8 }
  0x1d   :  { %p533_p0 = por %p532_p13, %p531_p12 }
  0x1f   :  { %p534_p1 = pnand %p533_p0, %p527_p11 }
  0x21   :  { %537 = shalt.err (!%p534_p1)
}
  0x22   :  { %s570_s0 = smov 128   ;;  %s571_s9 = smov 8  }
  0x23   :  { %34 = dma.hbm_to_vmem [thread:$0]  %s639_s1, 8192, %s29_s27, [#allocation6], %s570_s0, %s570_s0, %s571_s9  }
  0x24   :  { %560 = dma.done.wait [#allocation3], 2048  }
  0x25   :  { %561 = vsyncadd [#allocation3], 4294965248 }
  0x26   :  { %562 = dma.done.wait [#allocation6], 8192  }
  0x27   :  { %563 = vsyncadd [#allocation6], 4294959104  ;;  %v75_v0 = vld [vmem:[#allocation5 + $0x80] sm:$0xff]  ;;  %v76_v1 = vld [vmem:[#allocation5 + $0x88] sm:$0xff] }
  0x28   :  { %v59_v2 = vld [vmem:[#allocation5] sm:$0xff]  ;;  %v423_v3 = vpack.c.bf16 %v76_v1, %v75_v0  ;;  %v60_v4 = vld [vmem:[#allocation5 + $0x8] sm:$0xff]  ;;  %v77_v11 = vld [vmem:[#allocation5 + $0x90] sm:$0xff] }
  0x29   :  { %v107_v5 = vld [vmem:[#allocation5 + $0x180] sm:$0xff]  ;;  %v108_v6 = vld [vmem:[#allocation5 + $0x188] sm:$0xff]  ;;  %v425_v7 = vpack.c.bf16 %v60_v4, %v59_v2  ;;  %v78_v13 = vld [vmem:[#allocation5 + $0x98] sm:$0xff] }
  0x2a   :  { %v455_v8 = vpack.c.bf16 %v108_v6, %v107_v5  ;;  %v91_v9 = vld [vmem:[#allocation5 + $0x100] sm:$0xff]  ;;  %v92_v10 = vld [vmem:[#allocation5 + $0x108] sm:$0xff]  ;;  %424 = vmatprep.subr.bf16.mxu0 %v423_v3  ;;  %v61_v14 = vld [vmem:[#allocation5 + $0x10] sm:$0xff]  ;;  %v427_v16 = vpack.c.bf16 %v78_v13, %v77_v11 }
  0x2b   :  { %v457_v12 = vpack.c.bf16 %v92_v10, %v91_v9  ;;  %v62_v15 = vld [vmem:[#allocation5 + $0x18] sm:$0xff]  ;;  %426 = vmatpush3.bf16.msra.mxu0 %v425_v7  ;;  %v109_v18 = vld [vmem:[#allocation5 + $0x190] sm:$0xff]  ;;  %v79_v23 = vld [vmem:[#allocation5 + $0xa0] sm:$0xff] }
  0x2c   :  { %456 = vmatprep.subr.bf16.mxu1 %v455_v8  ;;  %v429_v17 = vpack.c.bf16 %v62_v15, %v61_v14  ;;  %v110_v19 = vld [vmem:[#allocation5 + $0x198] sm:$0xff]  ;;  %v93_v20 = vld [vmem:[#allocation5 + $0x110] sm:$0xff]  ;;  %v80_v24 = vld [vmem:[#allocation5 + $0xa8] sm:$0xff]  ;;  %428 = vmatprep.subr.bf16.mxu0 %v427_v16 }
  0x2d   :  { %458 = vmatpush3.bf16.msra.mxu1 %v457_v12  ;;  %v459_v21 = vpack.c.bf16 %v110_v19, %v109_v18  ;;  %v94_v22 = vld [vmem:[#allocation5 + $0x118] sm:$0xff]  ;;  %v431_v26 = vpack.c.bf16 %v80_v24, %v79_v23  ;;  %v63_v27 = vld [vmem:[#allocation5 + $0x20] sm:$0xff]  ;;  %v64_v28 = vld [vmem:[#allocation5 + $0x28] sm:$0xff] }
  0x2e   :  { %v461_v25 = vpack.c.bf16 %v94_v22, %v93_v20  ;;  %v111_v29 = vld [vmem:[#allocation5 + $0x1a0] sm:$0xff]  ;;  %v112_v30 = vld [vmem:[#allocation5 + $0x1a8] sm:$0xff]  ;;  %v433_v33 = vpack.c.bf16 %v64_v28, %v63_v27  ;;  %v81_v35 = vld [vmem:[#allocation5 + $0xb0] sm:$0xff] }
  0x2f   :  { %460 = vmatprep.subr.bf16.mxu1 %v459_v21  ;;  %v95_v31 = vld [vmem:[#allocation5 + $0x120] sm:$0xff]  ;;  %v96_v32 = vld [vmem:[#allocation5 + $0x128] sm:$0xff]  ;;  %430 = vmatpush3.bf16.msra.mxu0 %v429_v17  ;;  %v463_v34 = vpack.c.bf16 %v112_v30, %v111_v29  ;;  %v82_v36 = vld [vmem:[#allocation5 + $0xb8] sm:$0xff] }
  0x30   :  { %v65_v37 = vld [vmem:[#allocation5 + $0x30] sm:$0xff]  ;;  %432 = vmatprep.subr.bf16.mxu0 %v431_v26  ;;  %v465_v38 = vpack.c.bf16 %v96_v32, %v95_v31  ;;  %v435_v39 = vpack.c.bf16 %v82_v36, %v81_v35  ;;  %v66_v40 = vld [vmem:[#allocation5 + $0x38] sm:$0xff]  ;;  %v83_v46 = vld [vmem:[#allocation5 + $0xc0] sm:$0xff] }
  0x31   :  { %462 = vmatpush3.bf16.msra.mxu1 %v461_v25  ;;  %v113_v41 = vld [vmem:[#allocation5 + $0x1b0] sm:$0xff]  ;;  %v114_v42 = vld [vmem:[#allocation5 + $0x1b8] sm:$0xff]  ;;  %v84_v47 = vld [vmem:[#allocation5 + $0xc8] sm:$0xff]  ;;  %v437_v48 = vpack.c.bf16 %v66_v40, %v65_v37 }
  0x32   :  { %464 = vmatprep.subr.bf16.mxu1 %v463_v34  ;;  %v467_v43 = vpack.c.bf16 %v114_v42, %v113_v41  ;;  %v97_v44 = vld [vmem:[#allocation5 + $0x130] sm:$0xff]  ;;  %v98_v45 = vld [vmem:[#allocation5 + $0x138] sm:$0xff]  ;;  %v115_v49 = vld [vmem:[#allocation5 + $0x1c0] sm:$0xff]  ;;  %v439_v52 = vpack.c.bf16 %v84_v47, %v83_v46 }
  0x33   :  { %434 = vmatpush3.bf16.msra.mxu0 %v433_v33  ;;  %v116_v50 = vld [vmem:[#allocation5 + $0x1c8] sm:$0xff]  ;;  %v469_v51 = vpack.c.bf16 %v98_v45, %v97_v44  ;;  %v67_v53 = vld [vmem:[#allocation5 + $0x40] sm:$0xff]  ;;  %v85_v58 = vld [vmem:[#allocation5 + $0xd0] sm:$0xff] }
  0x34   :  { %436 = vmatprep.subr.bf16.mxu0 %v435_v39  ;;  %v68_v54 = vld [vmem:[#allocation5 + $0x48] sm:$0xff]  ;;  %v99_v55 = vld [vmem:[#allocation5 + $0x140] sm:$0xff]  ;;  %v471_v56 = vpack.c.bf16 %v116_v50, %v115_v49  ;;  %v86_v59 = vld [vmem:[#allocation5 + $0xd8] sm:$0xff] }
  0x35   :  { %466 = vmatpush3.bf16.msra.mxu1 %v465_v38  ;;  %v100_v57 = vld [vmem:[#allocation5 + $0x148] sm:$0xff]  ;;  %v117_v60 = vld [vmem:[#allocation5 + $0x1d0] sm:$0xff]  ;;  %v118_v61 = vld [vmem:[#allocation5 + $0x1d8] sm:$0xff]  ;;  %v441_v62 = vpack.c.bf16 %v68_v54, %v67_v53  ;;  %v443_v0 = vpack.c.bf16 %v86_v59, %v85_v58 }
  0x36   :  { %468 = vmatprep.subr.bf16.mxu1 %v467_v43  ;;  %v473_v63 = vpack.c.bf16 %v100_v57, %v99_v55  ;;  %v69_v1 = vld [vmem:[#allocation5 + $0x50] sm:$0xff]  ;;  %v70_v2 = vld [vmem:[#allocation5 + $0x58] sm:$0xff]  ;;  %v475_v4 = vpack.c.bf16 %v118_v61, %v117_v60  ;;  %v87_v6 = vld [vmem:[#allocation5 + $0xe0] sm:$0xff] }
  0x37   :  { %438 = vmatpush3.bf16.msra.mxu0 %v437_v48  ;;  %v101_v3 = vld [vmem:[#allocation5 + $0x150] sm:$0xff]  ;;  %v102_v5 = vld [vmem:[#allocation5 + $0x158] sm:$0xff]  ;;  %v88_v7 = vld [vmem:[#allocation5 + $0xe8] sm:$0xff]  ;;  %v445_v10 = vpack.c.bf16 %v70_v2, %v69_v1 }
  0x38   :  { %440 = vmatprep.subr.bf16.mxu0 %v439_v52  ;;  %v119_v8 = vld [vmem:[#allocation5 + $0x1e0] sm:$0xff]  ;;  %v120_v9 = vld [vmem:[#allocation5 + $0x1e8] sm:$0xff]  ;;  %v477_v13 = vpack.c.bf16 %v102_v5, %v101_v3  ;;  %v447_v14 = vpack.c.bf16 %v88_v7, %v87_v6  ;;  %v89_v19 = vld [vmem:[#allocation5 + $0xf0] sm:$0xff] }
  0x39   :  { %470 = vmatpush3.bf16.msra.mxu1 %v469_v51  ;;  %v71_v11 = vld [vmem:[#allocation5 + $0x60] sm:$0xff]  ;;  %v72_v12 = vld [vmem:[#allocation5 + $0x68] sm:$0xff]  ;;  %v479_v18 = vpack.c.bf16 %v120_v9, %v119_v8  ;;  %v90_v20 = vld [vmem:[#allocation5 + $0xf8] sm:$0xff] }
  0x3a   :  { %472 = vmatprep.subr.bf16.mxu1 %v471_v56  ;;  %v103_v15 = vld [vmem:[#allocation5 + $0x160] sm:$0xff]  ;;  %v104_v16 = vld [vmem:[#allocation5 + $0x168] sm:$0xff]  ;;  %v46_v21 = vld [vmem:[#allocation2 + $0x18] sm:$0xff]  ;;  %v449_v24 = vpack.c.bf16 %v72_v12, %v71_v11  ;;  %v451_v26 = vpack.c.bf16 %v90_v20, %v89_v19 }
  0x3b   :  { %442 = vmatpush3.bf16.msra.mxu0 %v441_v62  ;;  %v44_v17 = vld [vmem:[#allocation2 + $0x8] sm:$0xff]  ;;  %v121_v22 = vld [vmem:[#allocation5 + $0x1f0] sm:$0xff]  ;;  %v122_v23 = vld [vmem:[#allocation5 + $0x1f8] sm:$0xff]  ;;  %279 = vmatprep.mubr.f32.mxu1 %v46_v21  ;;  %v481_v25 = vpack.c.bf16 %v104_v16, %v103_v15 }
  0x3c   :  { %444 = vmatprep.subr.bf16.mxu0 %v443_v0  ;;  %194 = vmatprep.mubr.f32.mxu0 %v44_v17  ;;  %v73_v27 = vld [vmem:[#allocation5 + $0x70] sm:$0xff]  ;;  %v74_v28 = vld [vmem:[#allocation5 + $0x78] sm:$0xff]  ;;  %v483_v29 = vpack.c.bf16 %v122_v23, %v121_v22  ;;  %v43_v34 = vld [vmem:[#allocation2] sm:$0xff] }
  0x3d   :  { %474 = vmatpush3.bf16.msra.mxu1 %v473_v63  ;;  %v105_v30 = vld [vmem:[#allocation5 + $0x170] sm:$0xff]  ;;  %v106_v31 = vld [vmem:[#allocation5 + $0x178] sm:$0xff]  ;;  %v453_v32 = vpack.c.bf16 %v74_v28, %v73_v27  ;;  %v48_v36 = vld [vmem:[#allocation2 + $0x28] sm:$0xff] }
  0x3e   :  { %476 = vmatprep.subr.bf16.mxu1 %v475_v4  ;;  %v485_v33 = vpack.c.bf16 %v106_v31, %v105_v30  ;;  %v45_v35 = vld [vmem:[#allocation2 + $0x10] sm:$0xff]  ;;  %v50_v37 = vld [vmem:[#allocation2 + $0x38] sm:$0xff]  ;;  %v47_v38 = vld [vmem:[#allocation2 + $0x20] sm:$0xff] }
  0x3f   :  { %446 = vmatpush3.bf16.msra.mxu0 %v445_v10  ;;  %v49_v39 = vld [vmem:[#allocation2 + $0x30] sm:$0xff]  ;;  %v52_v40 = vld [vmem:[#allocation2 + $0x48] sm:$0xff]  ;;  %v54_v41 = vld [vmem:[#allocation2 + $0x58] sm:$0xff] }
  0x40   :  { %448 = vmatprep.subr.bf16.mxu0 %v447_v14  ;;  %v51_v42 = vld [vmem:[#allocation2 + $0x40] sm:$0xff]  ;;  %v53_v43 = vld [vmem:[#allocation2 + $0x50] sm:$0xff]  ;;  %v56_v44 = vld [vmem:[#allocation2 + $0x68] sm:$0xff] }
  0x41   :  { %478 = vmatpush3.bf16.msra.mxu1 %v477_v13  ;;  %v58_v45 = vld [vmem:[#allocation2 + $0x78] sm:$0xff]  ;;  %v55_v46 = vld [vmem:[#allocation2 + $0x60] sm:$0xff]  ;;  %v57_v47 = vld [vmem:[#allocation2 + $0x70] sm:$0xff] }
  0x42   :  { %480 = vmatprep.subr.bf16.mxu1 %v479_v18  ;;  %v334_v49 = vld [vmem:[%s640_s2] ss:$0 sm:$0xff]  ;;  %s572_s2 = smov [#allocation7]  }
  0x43   :  { %450 = vmatpush3.bf16.msra.mxu0 %v449_v24  ;;  %s321_s13 = sshll.u32 %s572_s2, 4  ;;  %s322_s13 = int_to_ptr.vmem [resolvable:$true] %s321_s13 }
  0x44   :  { %452 = vmatprep.subr.bf16.mxu0 %v451_v26  ;;  %s538_s14 = scalar_lea.vmem %s322_s13, 512  ;;  %p543_p3 = scmp.lt.s32.totalorder %s322_s13, %s322_s13 }
  0x45   :  { %482 = vmatpush3.bf16.msra.mxu1 %v481_v25  ;;  %p539_p2 = scmp.ne.s32.totalorder %s322_s13, %s538_s14  ;;  %p544_p4 = scmp.lt.s32.totalorder %s538_s14, %s538_s14 }
  0x46   :  { %484 = vmatprep.subr.bf16.mxu1 %v483_v29 }
  0x47   :  { %454 = vmatpush3.bf16.msra.mxu0 %v453_v32  ;;  %p545_p5 = por %p544_p4, %p543_p3 }
  0x49   :  { %486 = vmatpush3.bf16.msra.mxu1 %v485_v33  ;;  %p546_p6 = pnand %p545_p5, %p539_p2 }
  0x4a   :  { %195 = vmatmul.mubr.f32.vlgmr.msra.gmra.mrb[0].mxu0 %v43_v34 }
  0x4b   :  { %199 = vmatprep.mubr.f32.mxu0 %v48_v36 }
  0x4c   :  { %280 = vmatmul.mubr.f32.vlgmr.msra.gmra.mrb[0].mxu1 %v45_v35 }
  0x4d   :  { %284 = vmatprep.mubr.f32.mxu1 %v50_v37 }
  0x4e   :  { %200 = vmatmul.mubr.f32.gmra.mrb[2].mxu0 %v47_v38 }
  0x4f   :  { %204 = vmatprep.mubr.f32.mxu0 %v52_v40 }
  0x50   :  { %285 = vmatmul.mubr.f32.gmra.mrb[2].mxu1 %v49_v39 }
  0x51   :  { %289 = vmatprep.mubr.f32.mxu1 %v54_v41 }
  0x52   :  { %205 = vmatmul.mubr.f32.gmra.mrb[4].mxu0 %v51_v42 }
  0x53   :  { %209 = vmatprep.mubr.f32.mxu0 %v56_v44 }
  0x54   :  { %290 = vmatmul.mubr.f32.gmra.mrb[4].mxu1 %v53_v43 }
  0x55   :  { %294 = vmatprep.mubr.f32.mxu1 %v58_v45 }
  0x56   :  { %210 = vmatmul.mubr.f32.gmra.mrb[6].mxu0 %v55_v46 }
  0x58   :  { %295 = vmatmul.mubr.f32.gmra.mrb[6].mxu1 %v57_v47 }
 0x11d   :  { %v367_v48 = vpop.f32.mrb[0].mxu0 }
 0x11e   :  { %v368_v50 = vpop.f32.mrb[1].mxu0 }
 0x11f   :  { %v411_v51 = vpop.f32.mrb[0].mxu1  ;;  %v369_v52 = vadd.f32 %v368_v50, %v367_v48 }
 0x120   :  { %v412_v53 = vpop.f32.mrb[1].mxu1 }
 0x121   :  { %v413_v54 = vadd.f32 %v412_v53, %v411_v51  ;;  %v197_v55 = vadd.f32 %v369_v52, %v334_v49  ;;  %v370_v56 = vpop.f32.mrb[2].mxu0 }
 0x122   :  { %v371_v57 = vpop.f32.mrb[3].mxu0 }
 0x123   :  { %v414_v58 = vpop.f32.mrb[2].mxu1  ;;  %v282_v59 = vadd.f32 %v413_v54, %v197_v55  ;;  %v372_v60 = vadd.f32 %v371_v57, %v370_v56 }
 0x124   :  { %v415_v61 = vpop.f32.mrb[3].mxu1 }
 0x125   :  { %v416_v62 = vadd.f32 %v415_v61, %v414_v58  ;;  %vm300_vm0 = vcmp.ge.f32.partialorder %v282_v59, 0.0  ;;  %v304_v63 = vmul.f32 0.2, %v282_v59  ;;  %v202_v0 = vadd.f32 %v372_v60, %v334_v49  ;;  %v373_v1 = vpop.f32.mrb[4].mxu0 }
 0x126   :  { %v374_v2 = vpop.f32.mrb[5].mxu0 }
 0x127   :  { %v417_v3 = vpop.f32.mrb[4].mxu1  ;;  %v308_v4 = vsel %vm300_vm0, %v282_v59, %v304_v63  ;;  %v287_v5 = vadd.f32 %v416_v62, %v202_v0  ;;  %v375_v6 = vadd.f32 %v374_v2, %v373_v1 }
 0x128   :  { %v418_v7 = vpop.f32.mrb[5].mxu1  ;;  %312 = vst [vmem:[#allocation7] sm:$0xff] %v308_v4 }
 0x129   :  { %v419_v8 = vadd.f32 %v418_v7, %v417_v3  ;;  %vm301_vm1 = vcmp.ge.f32.partialorder %v287_v5, 0.0  ;;  %v305_v9 = vmul.f32 0.2, %v287_v5  ;;  %v207_v10 = vadd.f32 %v375_v6, %v334_v49  ;;  %v376_v11 = vpop.f32.mrb[6].mxu0 }
 0x12a   :  { %v377_v12 = vpop.f32.mrb[7].mxu0 }
 0x12b   :  { %v420_v13 = vpop.f32.mrb[6].mxu1  ;;  %v309_v14 = vsel %vm301_vm1, %v287_v5, %v305_v9  ;;  %v292_v15 = vadd.f32 %v419_v8, %v207_v10  ;;  %v378_v16 = vadd.f32 %v377_v12, %v376_v11 }
 0x12c   :  { %v421_v17 = vpop.f32.mrb[7].mxu1  ;;  %313 = vst [vmem:[#allocation7 + $0x8] sm:$0xff] %v309_v14 }
 0x12d   :  { %v422_v18 = vadd.f32 %v421_v17, %v420_v13  ;;  %vm302_vm2 = vcmp.ge.f32.partialorder %v292_v15, 0.0  ;;  %v306_v19 = vmul.f32 0.2, %v292_v15  ;;  %v212_v20 = vadd.f32 %v378_v16, %v334_v49 }
 0x12f   :  { %v310_v21 = vsel %vm302_vm2, %v292_v15, %v306_v19  ;;  %v297_v22 = vadd.f32 %v422_v18, %v212_v20 }
 0x130   :  { %314 = vst [vmem:[#allocation7 + $0x10] sm:$0xff] %v310_v21 }
 0x131   :  { %vm303_vm3 = vcmp.ge.f32.partialorder %v297_v22, 0.0  ;;  %v307_v23 = vmul.f32 0.2, %v297_v22 }
 0x133   :  { %v311_v24 = vsel %vm303_vm3, %v297_v22, %v307_v23 }
 0x134   :  { %315 = vst [vmem:[#allocation7 + $0x18] sm:$0xff] %v311_v24 }
 0x135   :  { %549 = shalt.err (!%p546_p6)
}
 0x136   :  { %s550_s17 = scalar_lea.hbm %s641_s3, 512 }
 0x137   :  { %p551_p7 = scmp.ne.s32.totalorder %s641_s3, %s550_s17  ;;  %p554_p8 = scmp.lt.u32.totalorder %s550_s17, %s641_s3 }
 0x139   :  { %p556_p9 = pnand %p554_p8, %p551_p7 }
 0x13b   :  { %559 = shalt.err (!%p556_p9)
}
 0x13c   :  { %327 = dma.vmem_to_hbm [thread:$0]  %s322_s13, 512, %s641_s3, [#allocation4], %s570_s0, %s570_s0, %s571_s9  }
 0x13d   :  { %564 = dma.done.wait [#allocation4], 512  }
 0x13e   :  { %565 = vsyncadd [#allocation4], 4294966784 }
 0x13f   :  { %331 = vsyncpa [#allocation3], 1 }
 0x140   :  { %332 = vsyncpa [#allocation6], 1 }
 0x141   :  { %333 = vsyncpa [#allocation4], 1 }

</bundles_post_ra>
